<compile_context>
chip_gen: v7x
topology: tpu7x:2x2x1
jax: 0.10.0
libtpu: 0.0.40
codegen_flags: <defaults>
</compile_context>

<pallas_src>
import functools

import jax
import jax.numpy as jnp
from jax.experimental import pallas as pl
from jax.experimental.pallas import tpu as pltpu


def _round_up(x, m):
    return (x + m - 1) // m * m


def _sublayer_connection_kernel(x_ref, w_ref, b_ref, o_ref, xn_ref, *, eps, d, tn):
    j = pl.program_id(1)

    # --- LayerNorm statistics: once per row tile, reused for every weight column block ---
    @pl.when(j == 0)
    def _():
        x = x_ref[...].astype(jnp.float32)                       # (TM, D)
        mean = jnp.mean(x, axis=-1, keepdims=True)               # (TM, 1)
        xc = x - mean
        # torch unbiased std: sqrt(sum(xc^2)/(D-1)); 1/(D-1) folded as a multiply.
        var = jnp.sum(xc * xc, axis=-1, keepdims=True) * jnp.float32(1.0 / (d - 1))
        inv = 1.0 / (jnp.sqrt(var) + jnp.float32(eps))           # exact; (TM,1) -> negligible cost
        xn_ref[...] = (xc * inv).astype(xn_ref.dtype)            # affine folded into W'

    # --- folded sublayer: ((x-mean)/(std+eps)) @ (diag(a_2) @ W)[:, blk] + (b_2 @ W + wb)[blk] ---
    y = jnp.dot(xn_ref[...], w_ref[...], preferred_element_type=jnp.float32) + b_ref[...]

    # --- residual connection: columns of x matching this output block ---
    if tn == d:                                                  # static branch (single N block)
        x_cols = x_ref[...]
    else:
        col0 = pl.multiple_of(j * tn, tn)
        x_cols = x_ref[:, pl.ds(col0, tn)]
    o_ref[...] = (x_cols.astype(jnp.float32) + y).astype(o_ref.dtype)


def sublayer_connection(x, a_2, b_2, w, wb, *, eps=1e-6, matmul_dtype=None):
    """x: (B, S, D). Returns x + Linear(LayerNorm(x)) with torch-style (unbiased, eps-on-std) LN."""
    B, S, D = x.shape
    R = B * S
    x2 = x.reshape(R, D)

    # bf16 MXU path for realistic hidden sizes; exact f32 for tiny D (matches reference tightly).
    if matmul_dtype is None:
        matmul_dtype = jnp.bfloat16 if D >= 512 else jnp.float32
    w_bytes = 2 if matmul_dtype == jnp.bfloat16 else 4
    out_bytes = x.dtype.itemsize
    sc_bytes = w_bytes  # xn scratch lives in the matmul dtype

    # --- one-time host-side fold of the LayerNorm affine into the Linear ---
    w_fold = (a_2[:, None] * w).astype(matmul_dtype)              # diag(a_2) @ W   (D, D)
    b_fold = (b_2 @ w + wb).reshape(1, D).astype(jnp.float32)     # b_2 @ W + wb    (1, D)

    # --- VMEM budget from the actual chip (64 MiB/TC on v7x, 128 MiB on v5e/v6e), 20% headroom ---
    try:
        vmem_cap = int(pltpu.get_tpu_info().vmem_capacity_bytes)
    except Exception:
        vmem_cap = 64 * 1024 * 1024                               # conservative (v7x per-TC)
    vmem_budget = max(int(0.8 * vmem_cap), 32 * 1024 * 1024)

    # --- weight blocking: fully resident (single-buffered) if it fits, else block the N axis ---
    if D * D * w_bytes <= vmem_budget // 3:
        tn = D
    else:
        tn = D
        for cand in (512, 256, 128):
            if D % cand == 0:
                tn = cand
                break
    nj = D // tn
    w_foot = (1 if nj == 1 else 2) * D * tn * w_bytes

    # --- row tile: largest multiple of 8 (<= 1024) whose working set fits the VMEM budget ---
    per_row = 2 * D * out_bytes + 2 * tn * out_bytes + D * sc_bytes
    avail = vmem_budget - w_foot - 4 * tn * 4
    tm = max(8, min(1024, (avail // per_row) // 8 * 8))
    tm = min(tm, _round_up(R, 8))
    # prefer a multiple-of-8 divisor of R: no ragged tail, no HBM pad/slice copies
    if R % 8 == 0 and R % tm != 0:
        lo = max(128, tm // 2)
        for cand in range(tm, lo - 1, -8):
            if R % cand == 0:
                tm = cand
                break
    # v7x: make sure the row grid has >= 2 steps so both TensorCores get work
    if pl.cdiv(R, tm) < 2 and R >= 16:
        tm = max(8, _round_up(pl.cdiv(R, 2), 8))
    ni = pl.cdiv(R, tm)

    needed = (2 * tm * D * out_bytes + 2 * tm * tn * out_bytes + tm * D * sc_bytes
              + w_foot + 4 * tn * 4)
    vmem_limit = int(min(max(2 * needed, 32 * 1024 * 1024), vmem_budget))

    if nj == 1:  # grid-invariant weight/bias: single-buffered, fetched once
        w_spec = pl.BlockSpec((D, tn), lambda i, j: (0, 0), pipeline_mode=pl.Buffered(1))
        b_spec = pl.BlockSpec((1, tn), lambda i, j: (0, 0), pipeline_mode=pl.Buffered(1))
    else:
        w_spec = pl.BlockSpec((D, tn), lambda i, j: (0, j))
        b_spec = pl.BlockSpec((1, tn), lambda i, j: (0, j))

    cost = pl.CostEstimate(
        flops=2 * R * D * D + 6 * R * D,
        transcendentals=R,
        bytes_accessed=2 * R * D * out_bytes + D * D * w_bytes + D * 4,
    )

    kernel = functools.partial(_sublayer_connection_kernel, eps=eps, d=D, tn=tn)
    out = pl.pallas_call(
        kernel,
        out_shape=jax.ShapeDtypeStruct((R, D), x.dtype),
        grid_spec=pltpu.PrefetchScalarGridSpec(
            num_scalar_prefetch=0,
            grid=(ni, nj),                                        # j (N blocks) innermost
            in_specs=[
                pl.BlockSpec((tm, D), lambda i, j: (i, 0)),       # x row tile (LN + residual)
                w_spec,                                           # folded weight
                b_spec,                                           # folded bias
            ],
            out_specs=pl.BlockSpec((tm, tn), lambda i, j: (i, j)),
            scratch_shapes=[pltpu.VMEM((tm, D), matmul_dtype)],   # normalized rows, reused over j
        ),
        compiler_params=pltpu.CompilerParams(
            dimension_semantics=("parallel", "arbitrary"),
            vmem_limit_bytes=vmem_limit,
        ),
        cost_estimate=cost,
    )(x2, w_fold, b_fold)

    return out.reshape(B, S, D)


def _reference(x, a_2, b_2, w, wb, eps=1e-6):
    mean = jnp.mean(x, axis=-1, keepdims=True)
    xc = x - mean
    d = x.shape[-1]
    std = jnp.sqrt(jnp.sum(xc * xc, axis=-1, keepdims=True) / (d - 1))
    normed = a_2 * xc / (std + eps) + b_2
    return x + (normed @ w + wb)


if __name__ == "__main__":
    key = jax.random.PRNGKey(0)
    B, S, D = 2, 8, 32   # batch=2, seq=8, hidden(size)=32

    kx, kw, kb = jax.random.split(key, 3)
    x = jax.random.normal(kx, (B, S, D), dtype=jnp.float32)

    # LayerNorm params as in __init__: ones / zeros (deterministic).
    a_2 = jnp.ones((D,), dtype=jnp.float32)
    b_2 = jnp.zeros((D,), dtype=jnp.float32)

    # Deterministic synthetic sublayer = Linear(D, D).
    w = jax.random.normal(kw, (D, D), dtype=jnp.float32) * 0.05
    wb = jax.random.normal(kb, (D,), dtype=jnp.float32) * 0.05

    out = sublayer_connection(x, a_2, b_2, w, wb)
    jax.block_until_ready(out)

    ref = _reference(x, a_2, b_2, w, wb)
    assert out.shape == ref.shape
    # f32 path + exact per-row division: agreement is ~1e-6; tolerance covers matmul
    # default-precision differences across backends.
    assert jnp.allclose(out, ref, atol=1e-3, rtol=1e-3), "mismatch vs reference"

    print("KERNEL_OK")
</pallas_src>

<mosaic_0001>
module attributes {stable_mosaic.version = 11 : i64} {
  func.func @_sublayer_connection_kernel(%arg0: i32, %arg1: i32, %arg2: memref<8x32xf32, #tpu.memory_space<vmem>>, %arg3: memref<32x32xf32, #tpu.memory_space<vmem>>, %arg4: memref<1x32xf32, #tpu.memory_space<vmem>>, %arg5: memref<8x32xf32, #tpu.memory_space<vmem>>, %arg6: memref<8x32xf32, #tpu.memory_space<vmem>>) attributes {dimension_semantics = [#tpu.dimension_semantics<parallel>, #tpu.dimension_semantics<arbitrary>], iteration_bounds = array<i64: 2, 1>, scalar_prefetch = 0 : i64, scratch_operands = 1 : i64, tpu.core_type = #tpu.core_type<tc>, window_params = [{transform_indices = @transform_0, window_bounds = array<i64: 8, 32>}, {pipeline_mode = #tpu.pipeline_mode<synchronous>, transform_indices = @transform_1, window_bounds = array<i64: 32, 32>}, {pipeline_mode = #tpu.pipeline_mode<synchronous>, transform_indices = @transform_2, window_bounds = array<i64: 1, 32>}, {transform_indices = @transform_3, window_bounds = array<i64: 8, 32>}]} {
    %c0_i32 = arith.constant 0 : i32
    %0 = arith.cmpi eq, %arg1, %c0_i32 : i32
    %1 = arith.extui %0 : i1 to i32
    %c0_i32_0 = arith.constant 0 : i32
    %2 = arith.cmpi ne, %1, %c0_i32_0 : i32
    scf.if %2 {
      %c0_10 = arith.constant 0 : index
      %c0_11 = arith.constant 0 : index
      %12 = vector.load %arg2[%c0_10, %c0_11] : memref<8x32xf32, #tpu.memory_space<vmem>>, vector<8x32xf32>
      %cst_12 = arith.constant dense<0.000000e+00> : vector<8xf32>
      %13 = vector.multi_reduction <add>, %12, %cst_12 [1] : vector<8x32xf32> to vector<8xf32>
      %14 = vector.shape_cast %13 : vector<8xf32> to vector<8x1xf32>
      %cst_13 = arith.constant 3.200000e+01 : f32
      %15 = vector.broadcast %cst_13 : f32 to vector<8x1xf32>
      %16 = arith.divf %14, %15 : vector<8x1xf32>
      %17 = vector.broadcast %16 : vector<8x1xf32> to vector<8x32xf32>
      %18 = arith.subf %12, %17 : vector<8x32xf32>
      %19 = arith.mulf %18, %18 : vector<8x32xf32>
      %cst_14 = arith.constant dense<0.000000e+00> : vector<8xf32>
      %20 = vector.multi_reduction <add>, %19, %cst_14 [1] : vector<8x32xf32> to vector<8xf32>
      %21 = vector.shape_cast %20 : vector<8xf32> to vector<8x1xf32>
      %cst_15 = arith.constant 0.0322580636 : f32
      %22 = vector.broadcast %cst_15 : f32 to vector<8x1xf32>
      %23 = arith.mulf %21, %22 : vector<8x1xf32>
      %24 = math.sqrt %23 : vector<8x1xf32>
      %cst_16 = arith.constant 9.99999997E-7 : f32
      %25 = vector.broadcast %cst_16 : f32 to vector<8x1xf32>
      %26 = arith.addf %24, %25 : vector<8x1xf32>
      %cst_17 = arith.constant 1.000000e+00 : f32
      %27 = vector.broadcast %cst_17 : f32 to vector<8x1xf32>
      %28 = arith.divf %27, %26 : vector<8x1xf32>
      %29 = vector.broadcast %28 : vector<8x1xf32> to vector<8x32xf32>
      %30 = arith.mulf %18, %29 : vector<8x32xf32>
      %c0_18 = arith.constant 0 : index
      %c0_19 = arith.constant 0 : index
      %31 = vector.load %arg6[%c0_18, %c0_19] : memref<8x32xf32, #tpu.memory_space<vmem>>, vector<8x32xf32>
      tpu.vector_store %arg6[%c0_18, %c0_19], %30 {strides = array<i32>} : memref<8x32xf32, #tpu.memory_space<vmem>>, vector<8x32xf32>,
    } else {
    }
    %c0 = arith.constant 0 : index
    %c0_1 = arith.constant 0 : index
    %3 = vector.load %arg6[%c0, %c0_1] : memref<8x32xf32, #tpu.memory_space<vmem>>, vector<8x32xf32>
    %c0_2 = arith.constant 0 : index
    %c0_3 = arith.constant 0 : index
    %4 = vector.load %arg3[%c0_2, %c0_3] : memref<32x32xf32, #tpu.memory_space<vmem>>, vector<32x32xf32>
    %cst = arith.constant dense<0.000000e+00> : vector<8x32xf32>
    %5 = tpu.matmul %3, %4, %cst {dimension_numbers = #tpu.dot_dimension_numbers<[1], [0], [0], [1], [0, 0, 1, 1], [], []>} : vector<8x32xf32>, vector<32x32xf32>, vector<8x32xf32> -> vector<8x32xf32>
    %c0_4 = arith.constant 0 : index
    %c0_5 = arith.constant 0 : index
    %6 = vector.load %arg4[%c0_4, %c0_5] : memref<1x32xf32, #tpu.memory_space<vmem>>, vector<1x32xf32>
    %7 = vector.broadcast %6 : vector<1x32xf32> to vector<8x32xf32>
    %8 = arith.addf %5, %7 : vector<8x32xf32>
    %c0_6 = arith.constant 0 : index
    %c0_7 = arith.constant 0 : index
    %9 = vector.load %arg2[%c0_6, %c0_7] : memref<8x32xf32, #tpu.memory_space<vmem>>, vector<8x32xf32>
    %10 = arith.addf %9, %8 : vector<8x32xf32>
    %c0_8 = arith.constant 0 : index
    %c0_9 = arith.constant 0 : index
    %11 = vector.load %arg5[%c0_8, %c0_9] : memref<8x32xf32, #tpu.memory_space<vmem>>, vector<8x32xf32>
    tpu.vector_store %arg5[%c0_8, %c0_9], %10 {strides = array<i32>} : memref<8x32xf32, #tpu.memory_space<vmem>>, vector<8x32xf32>,
    return
  }
  func.func @transform_0(%arg0: i32, %arg1: i32) -> (i32, i32) {
    %c0_i32 = arith.constant 0 : i32
    %c0_i32_0 = arith.constant 0 : i32
    return %arg0, %c0_i32 : i32, i32
  }
  func.func @transform_1(%arg0: i32, %arg1: i32) -> (i32, i32) {
    %c0_i32 = arith.constant 0 : i32
    %c0_i32_0 = arith.constant 0 : i32
    %c0_i32_1 = arith.constant 0 : i32
    return %c0_i32, %c0_i32_0 : i32, i32
  }
  func.func @transform_2(%arg0: i32, %arg1: i32) -> (i32, i32) {
    %c0_i32 = arith.constant 0 : i32
    %c0_i32_0 = arith.constant 0 : i32
    %c0_i32_1 = arith.constant 0 : i32
    return %c0_i32, %c0_i32_0 : i32, i32
  }
  func.func @transform_3(%arg0: i32, %arg1: i32) -> (i32, i32) {
    %c0_i32 = arith.constant 0 : i32
    return %arg0, %arg1 : i32, i32
  }
}

</mosaic_0001>

<bundles_post_ra>
// kernel: tpu_custom_call.1
= control target key start
LH: loop header
LB: loop body
LE: loop exit
PB: predicated region body
PF: predicated region fallthrough
CT: control target
= control target key end

     0   :  { %8 = vsyncpa [#allocation4], 0  ;;  %s958_s0 = inlined_call_operand.hbm [shape: f32[16,32], index: 0, kind: input, shape index: {}]   ;;  %s959_s1 = inlined_call_operand.hbm [shape: f32[32,32], index: 1, kind: input, shape index: {}]   ;;  %s960_s2 = inlined_call_operand.vmem [shape: f32[1,32], index: 2, kind: input, shape index: {}]   ;;  %s961_s3 = inlined_call_operand.hbm [shape: f32[16,32], index: 3, kind: output, shape index: {}]  }
   0x1   :  { %10 = vsyncpa [#allocation4 + $0x1], 0 }
   0x2   :  { %11 = vsyncpa [#allocation7], 0 }
   0x3   :  { %12 = vsyncpa [#allocation5], 0 }
   0x4   :  { %14 = vsyncpa [#allocation5 + $0x1], 0  ;;  %s732_s12 = smov 0   ;;  %s734_s13 = smov 0  }
   0x5   :  { %s736_s14 = smov 0   ;;  %s738_s15 = smov 0  }
   0x6   :  { %s740_s16 = smov 0   ;;  %s742_s17 = smov 0  }
   0x7 LB: > { %s437_s18 = sadd.s32 4294967295, %s702_s17   ;;  %s438_s19 = sadd.s32 4294967294, %s702_s17   ;;  %s702_s17 = sphi %s742_s17, %s20_s17   ;;  %s698_s16 = sphi %s740_s16, %s985_s16   ;;  %s694_s15 = sphi %s738_s15, %s984_s15   ;;  %s690_s14 = sphi %s736_s14, %s983_s14   ;;  %s686_s13 = sphi %s734_s13, %s982_s13   ;;  %s682_s12 = sphi %s732_s12, %s981_s12  }
   0x8   : > { %p52_p0 = scmp.ne.s32.totalorder %s686_s13, %s682_s12  ;;  %p766_p1 = scmp.eq.s32.totalorder %s437_s18, 0 }
   0x9   : > { %p770_p2 = scmp.eq.s32.totalorder %s437_s18, 1  ;;  %p126_p3 = scmp.eq.s32.totalorder %s438_s19, 1 }
   0xa   : > { %s966_s20 = scalar_select %p766_p1, 1, 0 }
   0xb   : > { %s967_s21 = scalar_select %p770_p2, 1, 0 }
   0xc   : > { %p776_p4 = por %p766_p1, %p52_p0  ;;  %p439_p5 = scmp.ge.s32.totalorder %s702_s17, 1 }
   0xd   : > { %p781_p6 = por %p126_p3, %p52_p0  ;;  %p133_p7 = scmp.lt.s32.totalorder %s702_s17, 3 }
   0xe   : > { %s968_s22 = scalar_select %p776_p4, 1, 0 }
   0xf   : > { %s969_s23 = scalar_select %p781_p6, 1, 0 }
  0x10   : > { %p786_p8 = pnand %p439_p5, %p133_p7  ;;  %s704_s25 = smov [#allocation6]  }
  0x11   : > { %s145_s26 = sshll.u32 %s704_s25, 4  ;;  %s32_s28 = sadd.s32 1, %s698_s16  ;;  %s146_s26 = int_to_ptr.vmem [resolvable:$true] %s145_s26 }
  0x12   : > { %s970_s24 = scalar_select %p786_p8, 1, 0 }
  0x13   : > { %p484_p9 = pneg %p786_p8  ;;  %s558_s4 = scalar_lea.hbm %s959_s1, 512 }
  0x14   : > { %p559_p12 = scmp.ne.s32.totalorder %s959_s1, %s558_s4  ;;  %p565_p5 = scmp.lt.u32.totalorder %s558_s4, %s959_s1 }
  0x15   : > { %p795_p11 = pnand %p484_p9, %p766_p1 }
  0x17   : > { %p560_p13 = pneg %p795_p11 }
  0x19   : > { %p561_p0 = pnand %p560_p13, %p559_p12 }
  0x1b   : > { %p562_p3 = pneg %p561_p0 }
  0x1d   : > { %p567_p7 = pnand %p565_p5, %p562_p3 }
  0x1f   : > { %570 = shalt.err (!%p567_p7)
}
  0x20   : > { %s571_s9 = scalar_lea.vmem %s146_s26, 512  ;;  %p579_p1 = scmp.lt.s32.totalorder %s146_s26, %s146_s26 }
  0x21   : > { %p572_p9 = scmp.ne.s32.totalorder %s146_s26, %s571_s9  ;;  %p580_p4 = scmp.lt.s32.totalorder %s571_s9, %s571_s9 }
  0x23   : > { %p574_p10 = pnand %p572_p9, %p560_p13  ;;  %p581_p8 = por %p580_p4, %p579_p1 }
  0x25   : > { %p575_p6 = pneg %p574_p10 }
  0x27   : > { %p582_p2 = pnand %p581_p8, %p575_p6 }
  0x29   : > { %585 = shalt.err (!%p582_p2)
}
  0x2a   : > { %s705_s10 = smov 128   ;;  %s706_s11 = smov 8  }
  0x2b   : > { %487 = dma.hbm_to_vmem [thread:$0]  (!%p795_p11), %s959_s1, 512, %s146_s26, [#allocation7], %s705_s10, %s705_s10, %s706_s11  }
  0x2c   : > { %p34_p1 = scmp.ge.s32.totalorder %s32_s28, 2  ;;  %s39_s25 = sadd.s32 1, %s690_s14 }
  0x2d   : > { %p46_p2 = scmp.ne.s32.totalorder %s690_s14, %s686_s13  ;;  %p47_p4 = scmp.eq.s32.totalorder %s702_s17, 0 }
  0x2e   : > { %s987_s28 = smov (%p34_p1, %s32_s28), 0  ;;  %p973_p8 = scmp.ne.s32.totalorder %s967_s21, 0 }
  0x2f   : > { %p822_p6 = por %p47_p4, %p46_p2  ;;  %s36_s27 = ssub.s32 %s698_s16, %s987_s28 }
  0x30   : > { %p828_p10 = por %p973_p8, %p46_p2  ;;  %p497_p12 = scmp.lt.s32.totalorder %s702_s17, 2 }
  0x31   : > { %p37_p11 = scmp.eq.s32.totalorder %s36_s27, 0  ;;  %s162_s26 = sand.u32 1, %s690_s14  }
  0x32   : > { %s442_s4 = sshll.u32 %s162_s26, 3  ;;  %s443_s6 = sshll.u32 %s698_s16, 7 }
  0x33   : > { %s837_s5 = scalar_select %p37_p11, %s690_s14, %s39_s25  }
  0x34   : > { %s843_s9 = scalar_lea.hbm %s958_s0, %s443_s6  ;;  %s166_s21 = scalar_lea.vmem [#allocation3], %s442_s4 }
  0x35   : > { %s173_s10 = sshll.u32 %s166_s21, 4  ;;  %p849_p13 = pnand %p497_p12, %p822_p6  ;;  %s845_s10 = int_to_ptr.vmem [resolvable:$true] %s173_s10 }
  0x36   : > { %s163_s18 = scalar_lea.sflag [#allocation4], %s162_s26  ;;  %s586_s19 = scalar_lea.hbm %s843_s9, 128 }
  0x37   : > { %p587_p0 = scmp.ne.s32.totalorder %s843_s9, %s586_s19  ;;  %p588_p3 = pneg %p849_p13 }
  0x38   : > { %s591_s4 = scalar_lea.hbm %s958_s0, 256  ;;  %p592_p9 = scmp.lt.u32.totalorder %s843_s9, %s958_s0 }
  0x39   : > { %p589_p5 = pnand %p588_p3, %p587_p0  ;;  %p593_p1 = scmp.lt.u32.totalorder %s591_s4, %s586_s19 }
  0x3a   : > { %p595_p4 = scmp.lt.u32.totalorder %s586_s19, %s843_s9 }
  0x3b   : > { %p590_p7 = pneg %p589_p5  ;;  %p594_p2 = por %p593_p1, %p592_p9 }
  0x3d   : > { %p596_p6 = por %p595_p4, %p594_p2 }
  0x3f   : > { %p597_p8 = pnand %p596_p6, %p590_p7 }
  0x41   : > { %600 = shalt.err (!%p597_p8)
}
  0x42   : > { %s601_s26 = scalar_lea.vmem %s845_s10, 128  ;;  %s707_s7 = smov [#allocation3]  }
  0x43   : > { %p602_p12 = scmp.ne.s32.totalorder %s845_s10, %s601_s26  ;;  %s606_s8 = sshll.u32 %s707_s7, 4  ;;  %s607_s8 = int_to_ptr.vmem [resolvable:$false] %s606_s8 }
  0x44   : > { %s608_s21 = scalar_lea.vmem %s607_s8, 256  ;;  %p609_p5 = scmp.lt.s32.totalorder %s845_s10, %s607_s8 }
  0x45   : > { %p604_p11 = pnand %p602_p12, %p588_p3  ;;  %p610_p9 = scmp.lt.s32.totalorder %s608_s21, %s601_s26 }
  0x47   : > { %p605_p0 = pneg %p604_p11  ;;  %p611_p1 = por %p610_p9, %p609_p5 }
  0x49   : > { %p612_p2 = pnand %p611_p1, %p605_p0 }
  0x4b   : > { %615 = shalt.err (!%p612_p2)
}
  0x4c   : > { %491 = dma.hbm_to_vmem [thread:$0]  (!%p849_p13), %s843_s9, 128, %s845_s10, %s163_s18  }
  0x4d   : > { %p976_p7 = scmp.ne.s32.totalorder %s970_s24, 0 }
  0x4e   : > { %s881_s19 = sand.u32 (!%p976_p7), 1, %s686_s13   ;;  %p977_p3 = scmp.ne.s32.totalorder (!%p976_p7), %s968_s22, 0 }
  0x4f   : > { %182 = sbr.rel (%p976_p7) target bundleno = 653 (0x28d), region = 32  ;;  %s445_s25 = sshll.u32 (!%p976_p7), %s881_s19, 3 }
  0x50   : > { %s185_s27 = scalar_lea.sflag (!%p976_p7), [#allocation4], %s881_s19  ;;  %s188_s4 = scalar_lea.vmem (!%p976_p7), [#allocation3], %s445_s25 }
  0x56   : > { %669 = dma.done.wait (%p977_p3), %s185_s27, 128  }
  0x57   : > { %671 = vsyncadd (%p977_p3), %s185_s27, 4294967168  ;;  %p978_p13 = scmp.ne.s32.totalorder %s966_s20, 0 }
  0x59   : > { %673 = dma.done.wait (%p978_p13), [#allocation7], 512  }
  0x5a   : > { %675 = vsyncadd (%p978_p13), [#allocation7], 4294966784  ;;  %vm220_vm0 = vcmask 261120   ;;  %v219_v0 = vld [vmem:[%s188_s4] sm:$0xff]  ;;  %v245_v7 = vld [vmem:[#allocation6] sm:$0xff]  ;;  %v708_v10 = vmov 0.0|0.0  }
  0x5b   : > { %v221_v1 = vsel %vm220_vm0, %v219_v0, 0.0  ;;  %v246_v8 = vld [vmem:[#allocation6 + $0x8] sm:$0xff]  ;;  %470 = vmatprep.subr.bf16.mxu0 %v708_v10  ;;  %v247_v11 = vld [vmem:[#allocation6 + $0x10] sm:$0xff]  ;;  %v248_v12 = vld [vmem:[#allocation6 + $0x18] sm:$0xff]  ;;  %vm709_vm1 = vmmov 0   ;;  %v710_v14 = vmov 0.0  }
  0x5c   : > { %222 = vadd.xlane.f32.xlu0 %v221_v1  ;;  %v471_v9 = vpack.c.bf16 %v246_v8, %v245_v7  ;;  %v474_v13 = vpack.c.bf16 %v248_v12, %v247_v11  ;;  %467 = vmatprep.mubr.msk.f32.mxu0 %vm709_vm1, %v710_v14  ;;  %v448_v26 = vld [vmem:[%s960_s2] ss:$0 sm:$0xff]  ;;  %s451_s24 = sshll.u32 %s694_s15, 7  ;;  %s214_s9 = scalar_lea.vmem [#allocation8], %s445_s25 }
  0x5d   : > { %s348_s10 = sshll.u32 %s214_s9, 4  ;;  %s908_s29 = scalar_lea.hbm %s961_s3, %s451_s24  ;;  %s910_s10 = int_to_ptr.vmem [resolvable:$true] %s348_s10 }
  0x5e   : > { %472 = vmatpush3.bf16.msra.mxu0 %v471_v9  ;;  %s334_s6 = scalar_lea.sflag [#allocation5], %s881_s19  ;;  %s616_s15 = scalar_lea.vmem %s910_s10, 128 }
  0x5f   : > { %473 = vmatprep.subr.bf16.mxu0 %v708_v10  ;;  %p617_p4 = scmp.ne.s32.totalorder %s910_s10, %s616_s15  ;;  %s711_s26 = smov [#allocation8]  }
  0x60   : > { %s620_s7 = sshll.u32 %s711_s26, 4  ;;  %s621_s7 = int_to_ptr.vmem [resolvable:$false] %s620_s7 }
  0x61   : > { %p618_p6 = pnand %p617_p4, %p828_p10  ;;  %s622_s8 = scalar_lea.vmem %s621_s7, 256 }
  0x62   : > { %475 = vmatpush3.bf16.msra.mxu0 %v474_v13  ;;  %p623_p12 = scmp.lt.s32.totalorder %s910_s10, %s621_s7  ;;  %p624_p11 = scmp.lt.s32.totalorder %s622_s8, %s616_s15 }
  0x63   : > { %p619_p8 = pneg %p618_p6 }
  0x64   : > { %p625_p0 = por %p624_p11, %p623_p12 }
  0x66   : > { %p626_p5 = pnand %p625_p0, %p619_p8 }
  0xe9   : > { %v223_v2 = vpop.xlane.xlu0 %222 }
  0xea   : > { %v225_v3 = vmul.f32 0.03125, %v223_v2 }
  0xec   : > { %v226_v4 = vsub.f32 %v219_v0, %v225_v3 }
  0xee   : > { %v227_v5 = vmul.f32 %v226_v4, %v226_v4 }
  0xf0   : > { %v228_v6 = vsel %vm220_vm0, %v227_v5, 0.0 }
  0xf1   : > { %229 = vadd.xlane.f32.xlu0 %v228_v6 }
 0x17e   : > { %v230_v15 = vpop.xlane.xlu0 %229 }
 0x17f   : > { %v231_v16 = vmul.f32 0.032258064, %v230_v15 }
 0x181   : > { %554 = vrsqrt.f32 %v231_v16  ;;  %vm234_vm2 = vcmp.eq.f32.partialorder %v231_v16, inf  ;;  %v237_v19 = vand.u32 2147483648, %v231_v16  ;;  %vm236_vm3 = vcmp.eq.f32.partialorder %v231_v16, 0.0 }
 0x18b   : > { %v555_v17 = vpop.eup %554 }
 0x18c   : > { %v233_v18 = vmul.f32 %v555_v17, %v231_v16 }
 0x18e   : > { %v235_v20 = vsel %vm234_vm2, %v231_v16, %v233_v18 }
 0x18f   : > { %v238_v21 = vsel %vm236_vm3, %v237_v19, %v235_v20 }
 0x190   : > { %v239_v22 = vadd.f32 1e-06, %v238_v21 }
 0x192   : > { %556 = vrcp.f32 %v239_v22 }
 0x19c   : > { %v557_v23 = vpop.eup %556 }
 0x19d   : > { %v242_v24 = vmul.f32 %v557_v23, %v226_v4 }
 0x19f   : > { %243 = vst.msk [vmem:[#allocation2] sm:$0xff] %vm220_vm0, %v242_v24 }
 0x1a6   : > { %v244_v25 = vld [vmem:[#allocation2] sm:$0xff] }
 0x1a7   : > { %468 = vmatmul.mubr.msk.f32.vlgmr.msra.gmra.mrb[0].mxu0 %vm220_vm0, %v244_v25 }
 0x27a   : > { %v326_v27 = vpop.f32.mrb[0].mxu0 }
 0x27b   : > { %v327_v28 = vadd.f32 %v448_v26, %v326_v27  ;;  %v469_v29 = vpop.f32.mrb[1].mxu0 }
 0x27d   : > { %v331_v30 = vadd.f32 %v327_v28, %v219_v0 }
 0x27f   : > { %332 = vst.msk [vmem:[%s214_s9] sm:$0xff] %vm220_vm0, %v331_v30 }
 0x280   : > { %629 = shalt.err (!%p626_p5)
}
 0x281   : > { %s630_s21 = scalar_lea.hbm %s908_s29, 128  ;;  %s634_s27 = scalar_lea.hbm %s961_s3, 256 }
 0x282   : > { %p631_p9 = scmp.ne.s32.totalorder %s908_s29, %s630_s21  ;;  %p635_p7 = scmp.lt.u32.totalorder %s908_s29, %s961_s3 }
 0x283   : > { %p636_p3 = scmp.lt.u32.totalorder %s634_s27, %s630_s21  ;;  %p638_p4 = scmp.lt.u32.totalorder %s630_s21, %s908_s29 }
 0x284   : > { %p632_p1 = pnand %p631_p9, %p828_p10 }
 0x285   : > { %p637_p13 = por %p636_p3, %p635_p7 }
 0x286   : > { %p633_p2 = pneg %p632_p1 }
 0x287   : > { %p639_p6 = por %p638_p4, %p637_p13 }
 0x289   : > { %p640_p8 = pnand %p639_p6, %p633_p2 }
 0x28b   : > { %643 = shalt.err (!%p640_p8)
}
 0x28c   : > { %482 = dma.vmem_to_hbm [thread:$0]  (%p828_p10), %s910_s10, 128, %s908_s29, %s334_s6  }
 0x28d PF: > { %s360_s22 = sand.u32 1, %s682_s12   ;;  %p979_p12 = scmp.ne.s32.totalorder %s969_s23, 0 }
 0x28e   : > { %p980_p11 = scmp.ge.s32.totalorder %s702_s17, 2  ;;  %s361_s24 = scalar_lea.sflag [#allocation5], %s360_s22 }
 0x290   : > { %p493_p0 = pnand %p980_p11, %p979_p12 }
 0x292   : > { %677 = dma.done.wait (!%p493_p0), %s361_s24, 128  }
 0x293   : > { %679 = vsyncadd (!%p493_p0), %s361_s24, 4294967168  ;;  %s20_s17 = sadd.s32 1, %s702_s17   ;;  %s981_s12 = smov %s686_s13 }
 0x294   : > { %p17_p5 = scmp.ge.s32.totalorder %s20_s17, 4   ;;  %s982_s13 = smov %s690_s14 }
 0x295   : > { %s983_s14 = smov %s837_s5  ;;  %s984_s15 = smov %s698_s16 }
 0x296   : > { %s985_s16 = smov %s987_s28  ;;  %19 = sbr.rel (!%p17_p5) target bundleno = 7 (0x7), region = 85 }
 0x29d   :  { %366 = vsyncpa [#allocation4], 1 }
 0x29e   :  { %368 = vsyncpa [#allocation4 + $0x1], 1 }
 0x29f   :  { %369 = vsyncpa [#allocation7], 1 }
 0x2a0   :  { %370 = vsyncpa [#allocation5], 1 }
 0x2a1   :  { %372 = vsyncpa [#allocation5 + $0x1], 1 }

</bundles_post_ra>
